<compile_context>
chip_gen: v6e
topology: v6e:2x2x1
jax: 0.10.0
libtpu: 0.0.40
codegen_flags: <defaults>
</compile_context>

<pallas_src>
import jax
import jax.numpy as jnp
from jax import lax
from jax.experimental import pallas as pl
from jax.experimental.pallas import tpu as pltpu

_MiB = 1024 * 1024


def _round_up(x, m):
    return (x + m - 1) // m * m


# ---------------------------------------------------------------------------
# Fused kernel: chunked input projection + LSTM recurrence + task-head epilogue
# PyTorch gate order (i, f, g, o) is preserved in the packed 4H weights.
# ---------------------------------------------------------------------------
def _make_lstm_heads_kernel(seq_len, hidden, t_chunk):
    H = hidden

    def _sigmoid(x):
        # sigmoid(x) = 0.5*tanh(x/2) + 0.5: one EUP tanh instead of exp + divide.
        # The recurrence is EUP/VPU bound (MXU mostly idle at small M), so this
        # trims the transcendental traffic on the sequential critical path.
        return 0.5 * jnp.tanh(0.5 * x) + 0.5

    def kernel(x_ref, wih_ref, whh_ref, b_ref, wh_ref, bh_ref,
               h_out_ref, y_out_ref, h_sc, c_sc, z_sc):
        c_idx = pl.program_id(1)              # time-chunk index ("arbitrary")
        n_chunks = pl.num_programs(1)
        T, B_t, _ = x_ref.shape               # T == t_chunk (static)

        @pl.when(c_idx == 0)
        def _():
            h_sc[...] = jnp.zeros_like(h_sc)
            c_sc[...] = jnp.zeros_like(c_sc)

        # ---- phase 1: time-parallel input projection for the whole chunk ----
        # One MXU matmul with M = T*B_t instead of T tiny M=B matmuls inside the
        # recurrence; bias folded in once per chunk.  Result written straight
        # into the flat (T*B_t, 4H) scratch in the MXU dtype (halves VMEM).
        x2d = x_ref[...].reshape(T * B_t, H)
        z = jnp.dot(x2d, wih_ref[...], preferred_element_type=jnp.float32)
        z_sc[...] = (z + b_ref[...]).astype(z_sc.dtype)

        # ---- phase 2: sequential recurrence (only h @ Whh on crit path) -----
        whh = whh_ref[...]
        # Dynamic trip count skips padded tail timesteps entirely (no per-step
        # jnp.where masking on h/c).
        t_stop = jnp.minimum(T, seq_len - c_idx * t_chunk)

        def step(t, carry):
            h_prev = h_sc[...]                 # bf16 - fed straight to the MXU
            c_prev = c_sc[...]
            d = jnp.dot(h_prev, whh, preferred_element_type=jnp.float32)
            row = pl.multiple_of(t * B_t, B_t)
            z_t = z_sc[pl.ds(row, B_t), :]
            i = _sigmoid(z_t[:, 0 * H:1 * H].astype(jnp.float32) + d[:, 0 * H:1 * H])
            f = _sigmoid(z_t[:, 1 * H:2 * H].astype(jnp.float32) + d[:, 1 * H:2 * H])
            g = jnp.tanh(z_t[:, 2 * H:3 * H].astype(jnp.float32) + d[:, 2 * H:3 * H])
            o = _sigmoid(z_t[:, 3 * H:4 * H].astype(jnp.float32) + d[:, 3 * H:4 * H])
            c_new = f * c_prev + i * g
            c_sc[...] = c_new                              # cell state stays f32
            h_sc[...] = (o * jnp.tanh(c_new)).astype(h_sc.dtype)
            return carry

        lax.fori_loop(0, t_stop, step, 0)

        # ---- phase 3: fused task heads in the last-chunk epilogue -----------
        @pl.when(c_idx == n_chunks - 1)
        def _():
            h = h_sc[...]
            h_out_ref[...] = h.astype(h_out_ref.dtype)
            y = jnp.dot(h, wh_ref[...],
                        preferred_element_type=jnp.float32) + bh_ref[...]
            y_out_ref[...] = y.astype(y_out_ref.dtype)

    return kernel


# ---------------------------------------------------------------------------
# pallas_call builder (jit-wrapped so x transpose+pad+cast fuse with the launch)
# ---------------------------------------------------------------------------
def _build_lstm_call(B, S, H, n_pad, b_tile, b_pad, tc, s_pad, n_chunks,
                     mxu_dtype_name, vmem_limit, single_buffer_weights):
    mxu_dtype = jnp.dtype(mxu_dtype_name)
    kernel = _make_lstm_heads_kernel(S, H, tc)

    def const_spec(shape):
        # Constant-index weight/bias blocks: the default double buffer is dead
        # weight, so request a single buffer when the jax version supports it.
        if single_buffer_weights:
            return pl.BlockSpec(shape, lambda b, c: (0, 0),
                                pipeline_mode=pl.Buffered(1))
        return pl.BlockSpec(shape, lambda b, c: (0, 0))

    call = pl.pallas_call(
        kernel,
        out_shape=(jax.ShapeDtypeStruct((b_pad, H), jnp.float32),
                   jax.ShapeDtypeStruct((b_pad, n_pad), jnp.float32)),
        grid_spec=pltpu.PrefetchScalarGridSpec(
            num_scalar_prefetch=0,
            grid=(b_pad // b_tile, n_chunks),
            in_specs=[
                pl.BlockSpec((tc, b_tile, H), lambda b, c: (c, b, 0)),   # x chunk
                const_spec((H, 4 * H)),                                  # Wih^T
                const_spec((H, 4 * H)),                                  # Whh^T
                const_spec((1, 4 * H)),                                  # b_ih+b_hh
                const_spec((H, n_pad)),                                  # heads W
                const_spec((1, n_pad)),                                  # heads b
            ],
            out_specs=(
                pl.BlockSpec((b_tile, H), lambda b, c: (b, 0)),          # h_T
                pl.BlockSpec((b_tile, n_pad), lambda b, c: (b, 0)),      # heads y
            ),
            scratch_shapes=[
                pltpu.VMEM((b_tile, H), mxu_dtype),           # h (recurrent, bf16)
                pltpu.VMEM((b_tile, H), jnp.float32),         # c (recurrent, f32)
                pltpu.VMEM((tc * b_tile, 4 * H), mxu_dtype),  # projected chunk Z
            ],
        ),
        compiler_params=pltpu.CompilerParams(
            dimension_semantics=("parallel", "arbitrary"),
            vmem_limit_bytes=vmem_limit,
        ),
    )

    def run(x_bsh, w_ih, w_hh, b_ih, b_hh, w_heads, b_heads):
        # Preprocessing shares the jit with the kernel so XLA fuses the
        # transpose + pad + bf16 cast into a single HBM pass over x.
        x = jnp.transpose(x_bsh, (1, 0, 2))
        x = jnp.pad(x, ((0, s_pad - S), (0, b_pad - B), (0, 0))).astype(mxu_dtype)
        wih_t = jnp.transpose(w_ih).astype(mxu_dtype)           # [H, 4H]
        whh_t = jnp.transpose(w_hh).astype(mxu_dtype)           # [H, 4H]
        bias = (b_ih + b_hh).reshape(1, 4 * H).astype(jnp.float32)
        wh = w_heads.astype(mxu_dtype)
        bh = b_heads.astype(jnp.float32)
        h_out, y_full = call(x, wih_t, whh_t, bias, wh, bh)
        return h_out[:B], y_full[:B]

    return jax.jit(run)


_CALL_CACHE = {}


def lstm_with_heads(x_bsh, w_ih, w_hh, b_ih, b_hh, w_heads, b_heads, *,
                    t_chunk=256, mxu_dtype=jnp.bfloat16, vmem_limit_bytes=None):
    """x_bsh: [B, S, H] batch_first activations. PyTorch-layout LSTM weights
    w_ih/w_hh: [4H, H], biases [4H]. Packed task heads w_heads: [H, N_pad],
    b_heads: [1, N_pad] with N_pad a multiple of 128 (lane-dense output).
    Returns (h, y_full): h == hidden.view(-1, H) of shape [B, H]; y_full [B, N_pad]."""
    B, S, H = x_bsh.shape
    n_pad = w_heads.shape[1]
    mxu_dtype = jnp.dtype(mxu_dtype)
    itemsize = mxu_dtype.itemsize
    sub = 16 if itemsize == 2 else 8

    # --- hardware queries (generation-aware sizing) --------------------------
    try:
        phys_vmem = int(pltpu.get_tpu_info().vmem_capacity_bytes)
        vmem_known = True
    except Exception:                       # non-TPU / interpret fallback
        phys_vmem = 64 * _MiB
        vmem_known = False
    kind = jax.devices()[0].device_kind.lower()
    is_v5e = ("v5e" in kind) or ("v5 lite" in kind) or ("v5lite" in kind)
    # v7x exposes ~64 MiB VMEM per TensorCore (and 2 TCs); v5e/v6e expose 128 MiB.
    is_v7_like = vmem_known and phys_vmem <= 80 * _MiB

    # --- batch padding / tiling (sublane alignment + parallel grid axis) -----
    b_cap = 128 if is_v5e else 256          # v6e/v7x MXU is 2x256x256
    if B > b_cap:
        b_tile = b_cap
        b_pad = _round_up(B, b_tile)
    else:
        b_pad = _round_up(B, sub)
        if is_v7_like and b_pad >= 2 * sub:
            # Split the batch into two tiles so megacore sharding of the
            # "parallel" axis engages the second TensorCore on v7x.
            b_pad = _round_up(B, 2 * sub)
            b_tile = b_pad // 2
        else:
            b_tile = b_pad

    # --- time chunking sized against the real VMEM footprint -----------------
    scratch_target = 28 * _MiB if (is_v7_like or not vmem_known) else 48 * _MiB
    H_l = _round_up(H, 128)
    G_l = _round_up(4 * H, 128)
    # conservative: assume weights are double-buffered even when Buffered(1) holds
    w_bytes = 2 * (2 * H_l * G_l + H_l * n_pad) * itemsize
    b_bytes = 2 * 8 * (G_l + n_pad) * 4
    state_bytes = b_tile * H_l * (itemsize + 4)                 # h_sc + c_sc
    out_bytes = 2 * b_tile * (H_l + n_pad) * 4                  # double-buffered outputs
    fixed = w_bytes + b_bytes + state_bytes + out_bytes + 2 * _MiB
    per_t = b_tile * (2 * H_l + G_l) * itemsize                 # x (x2 bufs) + z_sc row
    tc_cap = max(8, int((scratch_target - fixed) // per_t) // 8 * 8)
    tc = int(min(_round_up(t_chunk, 8), tc_cap, _round_up(S, 8)))
    s_pad = _round_up(S, tc)
    n_chunks = s_pad // tc

    if vmem_limit_bytes is None:
        est = fixed + tc * per_t
        vmem_limit = max(32 * _MiB, est + 8 * _MiB)
        vmem_limit = int(min(vmem_limit, phys_vmem - 8 * _MiB))
    else:
        vmem_limit = int(vmem_limit_bytes)

    cfg = (B, S, H, n_pad, b_tile, b_pad, tc, s_pad, n_chunks,
           mxu_dtype.name, vmem_limit)
    args = (x_bsh, w_ih, w_hh, b_ih, b_hh, w_heads, b_heads)

    fn = _CALL_CACHE.get(cfg)
    if fn is not None:
        return fn(*args)

    last_err = None
    for single_buf in (True, False):
        try:
            cand = _build_lstm_call(*cfg, single_buf)
            out = jax.block_until_ready(cand(*args))
        except Exception as err:   # pl.Buffered(1) unsupported -> double-buffered fallback
            last_err = err
            continue
        _CALL_CACHE[cfg] = cand
        return out
    raise last_err


# ---------------------------------------------------------------------------
# Task-head packing: all heads -> one [H, N_pad] weight (N_pad multiple of 128)
# ---------------------------------------------------------------------------
def pack_task_heads(head_params, hidden, lane=128):
    sizes = [int(p["w"].shape[0]) for p in head_params]
    total = sum(sizes)
    n_pad = max(lane, _round_up(total, lane))
    w = jnp.concatenate([jnp.transpose(p["w"]).astype(jnp.float32)
                         for p in head_params], axis=1)
    b = jnp.concatenate([p["b"].reshape(1, -1).astype(jnp.float32)
                         for p in head_params], axis=1)
    w = jnp.pad(w, ((0, 0), (0, n_pad - total)))
    b = jnp.pad(b, ((0, 0), (0, n_pad - total)))
    offs, off = [], 0
    for n in sizes:
        offs.append(off)
        off += n
    return w, b, offs, sizes


# ---------------------------------------------------------------------------
# Frozen-BERT stand-in (plain-JAX glue: embedding gathers + LayerNorm).
# TODO(synk): the pretrained 12-layer BertModel cannot be loaded in-script; the
# frozen encoder is replaced by deterministic word+segment+position embeddings
# with LayerNorm and masking to produce `sequence_output`.
# ---------------------------------------------------------------------------
def bert_stub_sequence_output(bert_params, input_ids, segment_ids, input_mask):
    S = input_ids.shape[1]
    x = (bert_params["word_emb"][input_ids]
         + bert_params["seg_emb"][segment_ids]
         + bert_params["pos_emb"][None, :S, :])
    mu = jnp.mean(x, axis=-1, keepdims=True)
    var = jnp.var(x, axis=-1, keepdims=True)
    x = (x - mu) / jnp.sqrt(var + 1e-12)
    x = x * input_mask[..., None].astype(x.dtype)
    return x                                                   # [B, S, H]


# ---------------------------------------------------------------------------
# Full Net forward: sequence_output -> LSTM final hidden -> fused task heads.
# ---------------------------------------------------------------------------
def net_forward(params, input_ids, segment_ids, input_mask, taskcla):
    seq_out = bert_stub_sequence_output(params["bert"], input_ids,
                                        segment_ids, input_mask)
    H = seq_out.shape[-1]
    w_heads, b_heads, offs, sizes = pack_task_heads(params["last"], H)
    h, y_full = lstm_with_heads(seq_out,
                                params["lstm"]["w_ih"], params["lstm"]["w_hh"],
                                params["lstm"]["b_ih"], params["lstm"]["b_hh"],
                                w_heads, b_heads)
    y = [y_full[:, off:off + n] for off, n in zip(offs, sizes)]
    return y, h


# ---------------------------------------------------------------------------
# Deterministic parameter construction (shapes implied by Net.__init__).
# ---------------------------------------------------------------------------
def init_params(key, vocab_size, max_pos, hidden, taskcla):
    ks = jax.random.split(key, 16)
    bound = 1.0 / jnp.sqrt(hidden)
    params = {
        "bert": {
            "word_emb": jax.random.normal(ks[0], (vocab_size, hidden),
                                          jnp.float32) * 0.02,
            "seg_emb": jax.random.normal(ks[1], (2, hidden),
                                         jnp.float32) * 0.02,
            "pos_emb": jax.random.normal(ks[2], (max_pos, hidden),
                                         jnp.float32) * 0.02,
        },
        "lstm": {
            "w_ih": jax.random.uniform(ks[3], (4 * hidden, hidden),
                                       jnp.float32, -bound, bound),
            "w_hh": jax.random.uniform(ks[4], (4 * hidden, hidden),
                                       jnp.float32, -bound, bound),
            "b_ih": jax.random.uniform(ks[5], (4 * hidden,),
                                       jnp.float32, -bound, bound),
            "b_hh": jax.random.uniform(ks[6], (4 * hidden,),
                                       jnp.float32, -bound, bound),
        },
        "last": [],
    }
    for idx, (_t, n) in enumerate(taskcla):
        kw, kb = jax.random.split(ks[7 + idx])
        params["last"].append({
            "w": jax.random.uniform(kw, (n, hidden), jnp.float32,
                                    -bound, bound),
            "b": jax.random.uniform(kb, (n,), jnp.float32, -bound, bound),
        })
    return params


if __name__ == "__main__":
    B, S, H = 2, 8, 32          # batch, seq_len, bert_hidden_size
    VOCAB, MAX_POS = 30, 64
    taskcla = [(0, 3), (1, 5)]

    key = jax.random.PRNGKey(0)
    k_par, k_ids, k_seg = jax.random.split(key, 3)

    params = init_params(k_par, VOCAB, MAX_POS, H, taskcla)

    input_ids = jax.random.randint(k_ids, (B, S), 0, VOCAB, dtype=jnp.int32)
    segment_ids = jax.random.randint(k_seg, (B, S), 0, 2, dtype=jnp.int32)
    input_mask = jnp.ones((B, S), dtype=jnp.int32)

    y, h = net_forward(params, input_ids, segment_ids, input_mask, taskcla)

    h = jax.block_until_ready(h)
    y = [jax.block_until_ready(yi) for yi in y]

    assert h.shape == (B, H)
    for (_t, n), yi in zip(taskcla, y):
        assert yi.shape == (B, n)

    print("KERNEL_OK")
</pallas_src>

<mosaic_0001>
module attributes {stable_mosaic.version = 11 : i64} {
  func.func @kernel(%arg0: i32, %arg1: i32, %arg2: memref<8x16x32xbf16, #tpu.memory_space<vmem>>, %arg3: memref<32x128xbf16, #tpu.memory_space<vmem>>, %arg4: memref<32x128xbf16, #tpu.memory_space<vmem>>, %arg5: memref<1x128xf32, #tpu.memory_space<vmem>>, %arg6: memref<32x128xbf16, #tpu.memory_space<vmem>>, %arg7: memref<1x128xf32, #tpu.memory_space<vmem>>, %arg8: memref<16x32xf32, #tpu.memory_space<vmem>>, %arg9: memref<16x128xf32, #tpu.memory_space<vmem>>, %arg10: memref<16x32xbf16, #tpu.memory_space<vmem>>, %arg11: memref<16x32xf32, #tpu.memory_space<vmem>>, %arg12: memref<128x128xbf16, #tpu.memory_space<vmem>>) attributes {dimension_semantics = [#tpu.dimension_semantics<parallel>, #tpu.dimension_semantics<arbitrary>], iteration_bounds = array<i64: 1, 1>, scalar_prefetch = 0 : i64, scratch_operands = 3 : i64, tpu.core_type = #tpu.core_type<tc>, window_params = [{transform_indices = @transform_0, window_bounds = array<i64: 8, 16, 32>}, {pipeline_mode = #tpu.pipeline_mode<synchronous>, transform_indices = @transform_1, window_bounds = array<i64: 32, 128>}, {pipeline_mode = #tpu.pipeline_mode<synchronous>, transform_indices = @transform_2, window_bounds = array<i64: 32, 128>}, {pipeline_mode = #tpu.pipeline_mode<synchronous>, transform_indices = @transform_3, window_bounds = array<i64: 1, 128>}, {pipeline_mode = #tpu.pipeline_mode<synchronous>, transform_indices = @transform_4, window_bounds = array<i64: 32, 128>}, {pipeline_mode = #tpu.pipeline_mode<synchronous>, transform_indices = @transform_5, window_bounds = array<i64: 1, 128>}, {transform_indices = @transform_6, window_bounds = array<i64: 16, 32>}, {transform_indices = @transform_7, window_bounds = array<i64: 16, 128>}]} {
    %c0_i32 = arith.constant 0 : i32
    %0 = arith.cmpi eq, %arg1, %c0_i32 : i32
    %1 = arith.extui %0 : i1 to i32
    %c0_i32_0 = arith.constant 0 : i32
    %2 = arith.cmpi ne, %1, %c0_i32_0 : i32
    scf.if %2 {
      %cst_17 = arith.constant 0.000000e+00 : bf16
      %21 = vector.broadcast %cst_17 : bf16 to vector<16x32xbf16>
      %c0_18 = arith.constant 0 : index
      %c0_19 = arith.constant 0 : index
      %22 = vector.load %arg10[%c0_18, %c0_19] : memref<16x32xbf16, #tpu.memory_space<vmem>>, vector<16x32xbf16>
      tpu.vector_store %arg10[%c0_18, %c0_19], %21 {strides = array<i32>} : memref<16x32xbf16, #tpu.memory_space<vmem>>, vector<16x32xbf16>,
      %cst_20 = arith.constant 0.000000e+00 : f32
      %23 = vector.broadcast %cst_20 : f32 to vector<16x32xf32>
      %c0_21 = arith.constant 0 : index
      %c0_22 = arith.constant 0 : index
      %24 = vector.load %arg11[%c0_21, %c0_22] : memref<16x32xf32, #tpu.memory_space<vmem>>, vector<16x32xf32>
      tpu.vector_store %arg11[%c0_21, %c0_22], %23 {strides = array<i32>} : memref<16x32xf32, #tpu.memory_space<vmem>>, vector<16x32xf32>,
    } else {
    }
    %c0 = arith.constant 0 : index
    %c0_1 = arith.constant 0 : index
    %c0_2 = arith.constant 0 : index
    %3 = vector.load %arg2[%c0, %c0_1, %c0_2] : memref<8x16x32xbf16, #tpu.memory_space<vmem>>, vector<8x16x32xbf16>
    %4 = vector.shape_cast %3 : vector<8x16x32xbf16> to vector<128x32xbf16>
    %c0_3 = arith.constant 0 : index
    %c0_4 = arith.constant 0 : index
    %5 = vector.load %arg3[%c0_3, %c0_4] : memref<32x128xbf16, #tpu.memory_space<vmem>>, vector<32x128xbf16>
    %cst = arith.constant dense<0.000000e+00> : vector<128x128xf32>
    %6 = tpu.matmul %4, %5, %cst {dimension_numbers = #tpu.dot_dimension_numbers<[1], [0], [0], [1], [0, 0, 1, 1], [], []>} : vector<128x32xbf16>, vector<32x128xbf16>, vector<128x128xf32> -> vector<128x128xf32>
    %c0_5 = arith.constant 0 : index
    %c0_6 = arith.constant 0 : index
    %7 = vector.load %arg5[%c0_5, %c0_6] : memref<1x128xf32, #tpu.memory_space<vmem>>, vector<1x128xf32>
    %8 = vector.broadcast %7 : vector<1x128xf32> to vector<128x128xf32>
    %9 = arith.addf %6, %8 : vector<128x128xf32>
    %10 = arith.truncf %9 : vector<128x128xf32> to vector<128x128xbf16>
    %c0_7 = arith.constant 0 : index
    %c0_8 = arith.constant 0 : index
    %11 = vector.load %arg12[%c0_7, %c0_8] : memref<128x128xbf16, #tpu.memory_space<vmem>>, vector<128x128xbf16>
    tpu.vector_store %arg12[%c0_7, %c0_8], %10 {strides = array<i32>} : memref<128x128xbf16, #tpu.memory_space<vmem>>, vector<128x128xbf16>,
    %c0_9 = arith.constant 0 : index
    %c0_10 = arith.constant 0 : index
    %12 = vector.load %arg4[%c0_9, %c0_10] : memref<32x128xbf16, #tpu.memory_space<vmem>>, vector<32x128xbf16>
    %c8_i32 = arith.constant 8 : i32
    %13 = arith.muli %arg1, %c8_i32 : i32
    %c8_i32_11 = arith.constant 8 : i32
    %14 = arith.subi %c8_i32_11, %13 : i32
    %c8_i32_12 = arith.constant 8 : i32
    %15 = arith.minsi %c8_i32_12, %14 : i32
    %c0_i32_13 = arith.constant 0 : i32
    %c0_i32_14 = arith.constant 0 : i32
    %16 = arith.subi %15, %c0_i32_14 : i32
    %17 = arith.addi %c0_i32_14, %16 : i32
    %c1_i32 = arith.constant 1 : i32
    scf.for %arg13 = %c0_i32_14 to %17 step %c1_i32  : i32 {
      %c0_17 = arith.constant 0 : index
      %c0_18 = arith.constant 0 : index
      %21 = vector.load %arg10[%c0_17, %c0_18] : memref<16x32xbf16, #tpu.memory_space<vmem>>, vector<16x32xbf16>
      %c0_19 = arith.constant 0 : index
      %c0_20 = arith.constant 0 : index
      %22 = vector.load %arg11[%c0_19, %c0_20] : memref<16x32xf32, #tpu.memory_space<vmem>>, vector<16x32xf32>
      %cst_21 = arith.constant dense<0.000000e+00> : vector<16x128xf32>
      %23 = tpu.matmul %21, %12, %cst_21 {dimension_numbers = #tpu.dot_dimension_numbers<[1], [0], [0], [1], [0, 0, 1, 1], [], []>} : vector<16x32xbf16>, vector<32x128xbf16>, vector<16x128xf32> -> vector<16x128xf32>
      %c16_i32 = arith.constant 16 : i32
      %24 = arith.muli %arg13, %c16_i32 : i32
      %25 = tpu.assume_multiple %24, 16 : i32
      %26 = arith.index_cast %25 : i32 to index
      %c0_22 = arith.constant 0 : index
      %27 = vector.load %arg12[%26, %c0_22] : memref<128x128xbf16, #tpu.memory_space<vmem>>, vector<16x128xbf16>
      %28 = vector.extract_strided_slice %27 {offsets = [0, 0], sizes = [16, 32], strides = [1, 1]} : vector<16x128xbf16> to vector<16x32xbf16>
      %29 = arith.extf %28 : vector<16x32xbf16> to vector<16x32xf32>
      %30 = vector.extract_strided_slice %23 {offsets = [0, 0], sizes = [16, 32], strides = [1, 1]} : vector<16x128xf32> to vector<16x32xf32>
      %31 = arith.addf %29, %30 : vector<16x32xf32>
      %cst_23 = arith.constant 5.000000e-01 : f32
      %32 = vector.broadcast %cst_23 : f32 to vector<16x32xf32>
      %33 = arith.mulf %32, %31 : vector<16x32xf32>
      %34 = math.tanh %33 : vector<16x32xf32>
      %cst_24 = arith.constant 5.000000e-01 : f32
      %35 = vector.broadcast %cst_24 : f32 to vector<16x32xf32>
      %36 = arith.mulf %35, %34 : vector<16x32xf32>
      %cst_25 = arith.constant 5.000000e-01 : f32
      %37 = vector.broadcast %cst_25 : f32 to vector<16x32xf32>
      %38 = arith.addf %36, %37 : vector<16x32xf32>
      %39 = vector.extract_strided_slice %27 {offsets = [0, 32], sizes = [16, 32], strides = [1, 1]} : vector<16x128xbf16> to vector<16x32xbf16>
      %40 = arith.extf %39 : vector<16x32xbf16> to vector<16x32xf32>
      %41 = vector.extract_strided_slice %23 {offsets = [0, 32], sizes = [16, 32], strides = [1, 1]} : vector<16x128xf32> to vector<16x32xf32>
      %42 = arith.addf %40, %41 : vector<16x32xf32>
      %cst_26 = arith.constant 5.000000e-01 : f32
      %43 = vector.broadcast %cst_26 : f32 to vector<16x32xf32>
      %44 = arith.mulf %43, %42 : vector<16x32xf32>
      %45 = math.tanh %44 : vector<16x32xf32>
      %cst_27 = arith.constant 5.000000e-01 : f32
      %46 = vector.broadcast %cst_27 : f32 to vector<16x32xf32>
      %47 = arith.mulf %46, %45 : vector<16x32xf32>
      %cst_28 = arith.constant 5.000000e-01 : f32
      %48 = vector.broadcast %cst_28 : f32 to vector<16x32xf32>
      %49 = arith.addf %47, %48 : vector<16x32xf32>
      %50 = vector.extract_strided_slice %27 {offsets = [0, 64], sizes = [16, 32], strides = [1, 1]} : vector<16x128xbf16> to vector<16x32xbf16>
      %51 = arith.extf %50 : vector<16x32xbf16> to vector<16x32xf32>
      %52 = vector.extract_strided_slice %23 {offsets = [0, 64], sizes = [16, 32], strides = [1, 1]} : vector<16x128xf32> to vector<16x32xf32>
      %53 = arith.addf %51, %52 : vector<16x32xf32>
      %54 = math.tanh %53 : vector<16x32xf32>
      %55 = vector.extract_strided_slice %27 {offsets = [0, 96], sizes = [16, 32], strides = [1, 1]} : vector<16x128xbf16> to vector<16x32xbf16>
      %56 = arith.extf %55 : vector<16x32xbf16> to vector<16x32xf32>
      %57 = vector.extract_strided_slice %23 {offsets = [0, 96], sizes = [16, 32], strides = [1, 1]} : vector<16x128xf32> to vector<16x32xf32>
      %58 = arith.addf %56, %57 : vector<16x32xf32>
      %cst_29 = arith.constant 5.000000e-01 : f32
      %59 = vector.broadcast %cst_29 : f32 to vector<16x32xf32>
      %60 = arith.mulf %59, %58 : vector<16x32xf32>
      %61 = math.tanh %60 : vector<16x32xf32>
      %cst_30 = arith.constant 5.000000e-01 : f32
      %62 = vector.broadcast %cst_30 : f32 to vector<16x32xf32>
      %63 = arith.mulf %62, %61 : vector<16x32xf32>
      %cst_31 = arith.constant 5.000000e-01 : f32
      %64 = vector.broadcast %cst_31 : f32 to vector<16x32xf32>
      %65 = arith.addf %63, %64 : vector<16x32xf32>
      %66 = arith.mulf %49, %22 : vector<16x32xf32>
      %67 = arith.mulf %38, %54 : vector<16x32xf32>
      %68 = arith.addf %66, %67 : vector<16x32xf32>
      %c0_32 = arith.constant 0 : index
      %c0_33 = arith.constant 0 : index
      %69 = vector.load %arg11[%c0_32, %c0_33] : memref<16x32xf32, #tpu.memory_space<vmem>>, vector<16x32xf32>
      tpu.vector_store %arg11[%c0_32, %c0_33], %68 {strides = array<i32>} : memref<16x32xf32, #tpu.memory_space<vmem>>, vector<16x32xf32>,
      %70 = math.tanh %68 : vector<16x32xf32>
      %71 = arith.mulf %65, %70 : vector<16x32xf32>
      %72 = arith.truncf %71 : vector<16x32xf32> to vector<16x32xbf16>
      %c0_34 = arith.constant 0 : index
      %c0_35 = arith.constant 0 : index
      %73 = vector.load %arg10[%c0_34, %c0_35] : memref<16x32xbf16, #tpu.memory_space<vmem>>, vector<16x32xbf16>
      tpu.vector_store %arg10[%c0_34, %c0_35], %72 {strides = array<i32>} : memref<16x32xbf16, #tpu.memory_space<vmem>>, vector<16x32xbf16>,
    }
    %c0_i32_15 = arith.constant 0 : i32
    %18 = arith.cmpi eq, %arg1, %c0_i32_15 : i32
    %19 = arith.extui %18 : i1 to i32
    %c0_i32_16 = arith.constant 0 : i32
    %20 = arith.cmpi ne, %19, %c0_i32_16 : i32
    scf.if %20 {
      %c0_17 = arith.constant 0 : index
      %c0_18 = arith.constant 0 : index
      %21 = vector.load %arg10[%c0_17, %c0_18] : memref<16x32xbf16, #tpu.memory_space<vmem>>, vector<16x32xbf16>
      %22 = arith.extf %21 : vector<16x32xbf16> to vector<16x32xf32>
      %c0_19 = arith.constant 0 : index
      %c0_20 = arith.constant 0 : index
      %23 = vector.load %arg8[%c0_19, %c0_20] : memref<16x32xf32, #tpu.memory_space<vmem>>, vector<16x32xf32>
      tpu.vector_store %arg8[%c0_19, %c0_20], %22 {strides = array<i32>} : memref<16x32xf32, #tpu.memory_space<vmem>>, vector<16x32xf32>,
      %c0_21 = arith.constant 0 : index
      %c0_22 = arith.constant 0 : index
      %24 = vector.load %arg6[%c0_21, %c0_22] : memref<32x128xbf16, #tpu.memory_space<vmem>>, vector<32x128xbf16>
      %cst_23 = arith.constant dense<0.000000e+00> : vector<16x128xf32>
      %25 = tpu.matmul %21, %24, %cst_23 {dimension_numbers = #tpu.dot_dimension_numbers<[1], [0], [0], [1], [0, 0, 1, 1], [], []>} : vector<16x32xbf16>, vector<32x128xbf16>, vector<16x128xf32> -> vector<16x128xf32>
      %c0_24 = arith.constant 0 : index
      %c0_25 = arith.constant 0 : index
      %26 = vector.load %arg7[%c0_24, %c0_25] : memref<1x128xf32, #tpu.memory_space<vmem>>, vector<1x128xf32>
      %27 = vector.broadcast %26 : vector<1x128xf32> to vector<16x128xf32>
      %28 = arith.addf %25, %27 : vector<16x128xf32>
      %c0_26 = arith.constant 0 : index
      %c0_27 = arith.constant 0 : index
      %29 = vector.load %arg9[%c0_26, %c0_27] : memref<16x128xf32, #tpu.memory_space<vmem>>, vector<16x128xf32>
      tpu.vector_store %arg9[%c0_26, %c0_27], %28 {strides = array<i32>} : memref<16x128xf32, #tpu.memory_space<vmem>>, vector<16x128xf32>,
    } else {
    }
    return
  }
  func.func @transform_0(%arg0: i32, %arg1: i32) -> (i32, i32, i32) {
    %c0_i32 = arith.constant 0 : i32
    %c0_i32_0 = arith.constant 0 : i32
    return %arg1, %arg0, %c0_i32 : i32, i32, i32
  }
  func.func @transform_1(%arg0: i32, %arg1: i32) -> (i32, i32) {
    %c0_i32 = arith.constant 0 : i32
    %c0_i32_0 = arith.constant 0 : i32
    %c0_i32_1 = arith.constant 0 : i32
    return %c0_i32, %c0_i32_0 : i32, i32
  }
  func.func @transform_2(%arg0: i32, %arg1: i32) -> (i32, i32) {
    %c0_i32 = arith.constant 0 : i32
    %c0_i32_0 = arith.constant 0 : i32
    %c0_i32_1 = arith.constant 0 : i32
    return %c0_i32, %c0_i32_0 : i32, i32
  }
  func.func @transform_3(%arg0: i32, %arg1: i32) -> (i32, i32) {
    %c0_i32 = arith.constant 0 : i32
    %c0_i32_0 = arith.constant 0 : i32
    %c0_i32_1 = arith.constant 0 : i32
    return %c0_i32, %c0_i32_0 : i32, i32
  }
  func.func @transform_4(%arg0: i32, %arg1: i32) -> (i32, i32) {
    %c0_i32 = arith.constant 0 : i32
    %c0_i32_0 = arith.constant 0 : i32
    %c0_i32_1 = arith.constant 0 : i32
    return %c0_i32, %c0_i32_0 : i32, i32
  }
  func.func @transform_5(%arg0: i32, %arg1: i32) -> (i32, i32) {
    %c0_i32 = arith.constant 0 : i32
    %c0_i32_0 = arith.constant 0 : i32
    %c0_i32_1 = arith.constant 0 : i32
    return %c0_i32, %c0_i32_0 : i32, i32
  }
  func.func @transform_6(%arg0: i32, %arg1: i32) -> (i32, i32) {
    %c0_i32 = arith.constant 0 : i32
    %c0_i32_0 = arith.constant 0 : i32
    return %arg0, %c0_i32 : i32, i32
  }
  func.func @transform_7(%arg0: i32, %arg1: i32) -> (i32, i32) {
    %c0_i32 = arith.constant 0 : i32
    %c0_i32_0 = arith.constant 0 : i32
    return %arg0, %c0_i32 : i32, i32
  }
}

module attributes {stable_mosaic.version = 11 : i64} {
  func.func @kernel(%arg0: i32, %arg1: i32, %arg2: memref<8x16x32xbf16, #tpu.memory_space<vmem>>, %arg3: memref<32x128xbf16, #tpu.memory_space<vmem>>, %arg4: memref<32x128xbf16, #tpu.memory_space<vmem>>, %arg5: memref<1x128xf32, #tpu.memory_space<vmem>>, %arg6: memref<32x128xbf16, #tpu.memory_space<vmem>>, %arg7: memref<1x128xf32, #tpu.memory_space<vmem>>, %arg8: memref<16x32xf32, #tpu.memory_space<vmem>>, %arg9: memref<16x128xf32, #tpu.memory_space<vmem>>, %arg10: memref<16x32xbf16, #tpu.memory_space<vmem>>, %arg11: memref<16x32xf32, #tpu.memory_space<vmem>>, %arg12: memref<128x128xbf16, #tpu.memory_space<vmem>>) attributes {dimension_semantics = [#tpu.dimension_semantics<parallel>, #tpu.dimension_semantics<arbitrary>], iteration_bounds = array<i64: 1, 1>, scalar_prefetch = 0 : i64, scratch_operands = 3 : i64, tpu.core_type = #tpu.core_type<tc>, window_params = [{transform_indices = @transform_0, window_bounds = array<i64: 8, 16, 32>}, {pipeline_mode = #tpu.pipeline_mode<synchronous>, transform_indices = @transform_1, window_bounds = array<i64: 32, 128>}, {pipeline_mode = #tpu.pipeline_mode<synchronous>, transform_indices = @transform_2, window_bounds = array<i64: 32, 128>}, {pipeline_mode = #tpu.pipeline_mode<synchronous>, transform_indices = @transform_3, window_bounds = array<i64: 1, 128>}, {pipeline_mode = #tpu.pipeline_mode<synchronous>, transform_indices = @transform_4, window_bounds = array<i64: 32, 128>}, {pipeline_mode = #tpu.pipeline_mode<synchronous>, transform_indices = @transform_5, window_bounds = array<i64: 1, 128>}, {transform_indices = @transform_6, window_bounds = array<i64: 16, 32>}, {transform_indices = @transform_7, window_bounds = array<i64: 16, 128>}]} {
    %c0_i32 = arith.constant 0 : i32
    %0 = arith.cmpi eq, %arg1, %c0_i32 : i32
    %1 = arith.extui %0 : i1 to i32
    %c0_i32_0 = arith.constant 0 : i32
    %2 = arith.cmpi ne, %1, %c0_i32_0 : i32
    scf.if %2 {
      %cst_17 = arith.constant 0.000000e+00 : bf16
      %21 = vector.broadcast %cst_17 : bf16 to vector<16x32xbf16>
      %c0_18 = arith.constant 0 : index
      %c0_19 = arith.constant 0 : index
      %22 = vector.load %arg10[%c0_18, %c0_19] : memref<16x32xbf16, #tpu.memory_space<vmem>>, vector<16x32xbf16>
      tpu.vector_store %arg10[%c0_18, %c0_19], %21 {strides = array<i32>} : memref<16x32xbf16, #tpu.memory_space<vmem>>, vector<16x32xbf16>,
      %cst_20 = arith.constant 0.000000e+00 : f32
      %23 = vector.broadcast %cst_20 : f32 to vector<16x32xf32>
      %c0_21 = arith.constant 0 : index
      %c0_22 = arith.constant 0 : index
      %24 = vector.load %arg11[%c0_21, %c0_22] : memref<16x32xf32, #tpu.memory_space<vmem>>, vector<16x32xf32>
      tpu.vector_store %arg11[%c0_21, %c0_22], %23 {strides = array<i32>} : memref<16x32xf32, #tpu.memory_space<vmem>>, vector<16x32xf32>,
    } else {
    }
    %c0 = arith.constant 0 : index
    %c0_1 = arith.constant 0 : index
    %c0_2 = arith.constant 0 : index
    %3 = vector.load %arg2[%c0, %c0_1, %c0_2] : memref<8x16x32xbf16, #tpu.memory_space<vmem>>, vector<8x16x32xbf16>
    %4 = vector.shape_cast %3 : vector<8x16x32xbf16> to vector<128x32xbf16>
    %c0_3 = arith.constant 0 : index
    %c0_4 = arith.constant 0 : index
    %5 = vector.load %arg3[%c0_3, %c0_4] : memref<32x128xbf16, #tpu.memory_space<vmem>>, vector<32x128xbf16>
    %cst = arith.constant dense<0.000000e+00> : vector<128x128xf32>
    %6 = tpu.matmul %4, %5, %cst {dimension_numbers = #tpu.dot_dimension_numbers<[1], [0], [0], [1], [0, 0, 1, 1], [], []>} : vector<128x32xbf16>, vector<32x128xbf16>, vector<128x128xf32> -> vector<128x128xf32>
    %c0_5 = arith.constant 0 : index
    %c0_6 = arith.constant 0 : index
    %7 = vector.load %arg5[%c0_5, %c0_6] : memref<1x128xf32, #tpu.memory_space<vmem>>, vector<1x128xf32>
    %8 = vector.broadcast %7 : vector<1x128xf32> to vector<128x128xf32>
    %9 = arith.addf %6, %8 : vector<128x128xf32>
    %10 = arith.truncf %9 : vector<128x128xf32> to vector<128x128xbf16>
    %c0_7 = arith.constant 0 : index
    %c0_8 = arith.constant 0 : index
    %11 = vector.load %arg12[%c0_7, %c0_8] : memref<128x128xbf16, #tpu.memory_space<vmem>>, vector<128x128xbf16>
    tpu.vector_store %arg12[%c0_7, %c0_8], %10 {strides = array<i32>} : memref<128x128xbf16, #tpu.memory_space<vmem>>, vector<128x128xbf16>,
    %c0_9 = arith.constant 0 : index
    %c0_10 = arith.constant 0 : index
    %12 = vector.load %arg4[%c0_9, %c0_10] : memref<32x128xbf16, #tpu.memory_space<vmem>>, vector<32x128xbf16>
    %c8_i32 = arith.constant 8 : i32
    %13 = arith.muli %arg1, %c8_i32 : i32
    %c8_i32_11 = arith.constant 8 : i32
    %14 = arith.subi %c8_i32_11, %13 : i32
    %c8_i32_12 = arith.constant 8 : i32
    %15 = arith.minsi %c8_i32_12, %14 : i32
    %c0_i32_13 = arith.constant 0 : i32
    %c0_i32_14 = arith.constant 0 : i32
    %16 = arith.subi %15, %c0_i32_14 : i32
    %17 = arith.addi %c0_i32_14, %16 : i32
    %c1_i32 = arith.constant 1 : i32
    scf.for %arg13 = %c0_i32_14 to %17 step %c1_i32  : i32 {
      %c0_17 = arith.constant 0 : index
      %c0_18 = arith.constant 0 : index
      %21 = vector.load %arg10[%c0_17, %c0_18] : memref<16x32xbf16, #tpu.memory_space<vmem>>, vector<16x32xbf16>
      %c0_19 = arith.constant 0 : index
      %c0_20 = arith.constant 0 : index
      %22 = vector.load %arg11[%c0_19, %c0_20] : memref<16x32xf32, #tpu.memory_space<vmem>>, vector<16x32xf32>
      %cst_21 = arith.constant dense<0.000000e+00> : vector<16x128xf32>
      %23 = tpu.matmul %21, %12, %cst_21 {dimension_numbers = #tpu.dot_dimension_numbers<[1], [0], [0], [1], [0, 0, 1, 1], [], []>} : vector<16x32xbf16>, vector<32x128xbf16>, vector<16x128xf32> -> vector<16x128xf32>
      %c16_i32 = arith.constant 16 : i32
      %24 = arith.muli %arg13, %c16_i32 : i32
      %25 = tpu.assume_multiple %24, 16 : i32
      %26 = arith.index_cast %25 : i32 to index
      %c0_22 = arith.constant 0 : index
      %27 = vector.load %arg12[%26, %c0_22] : memref<128x128xbf16, #tpu.memory_space<vmem>>, vector<16x128xbf16>
      %28 = vector.extract_strided_slice %27 {offsets = [0, 0], sizes = [16, 32], strides = [1, 1]} : vector<16x128xbf16> to vector<16x32xbf16>
      %29 = arith.extf %28 : vector<16x32xbf16> to vector<16x32xf32>
      %30 = vector.extract_strided_slice %23 {offsets = [0, 0], sizes = [16, 32], strides = [1, 1]} : vector<16x128xf32> to vector<16x32xf32>
      %31 = arith.addf %29, %30 : vector<16x32xf32>
      %cst_23 = arith.constant 5.000000e-01 : f32
      %32 = vector.broadcast %cst_23 : f32 to vector<16x32xf32>
      %33 = arith.mulf %32, %31 : vector<16x32xf32>
      %34 = math.tanh %33 : vector<16x32xf32>
      %cst_24 = arith.constant 5.000000e-01 : f32
      %35 = vector.broadcast %cst_24 : f32 to vector<16x32xf32>
      %36 = arith.mulf %35, %34 : vector<16x32xf32>
      %cst_25 = arith.constant 5.000000e-01 : f32
      %37 = vector.broadcast %cst_25 : f32 to vector<16x32xf32>
      %38 = arith.addf %36, %37 : vector<16x32xf32>
      %39 = vector.extract_strided_slice %27 {offsets = [0, 32], sizes = [16, 32], strides = [1, 1]} : vector<16x128xbf16> to vector<16x32xbf16>
      %40 = arith.extf %39 : vector<16x32xbf16> to vector<16x32xf32>
      %41 = vector.extract_strided_slice %23 {offsets = [0, 32], sizes = [16, 32], strides = [1, 1]} : vector<16x128xf32> to vector<16x32xf32>
      %42 = arith.addf %40, %41 : vector<16x32xf32>
      %cst_26 = arith.constant 5.000000e-01 : f32
      %43 = vector.broadcast %cst_26 : f32 to vector<16x32xf32>
      %44 = arith.mulf %43, %42 : vector<16x32xf32>
      %45 = math.tanh %44 : vector<16x32xf32>
      %cst_27 = arith.constant 5.000000e-01 : f32
      %46 = vector.broadcast %cst_27 : f32 to vector<16x32xf32>
      %47 = arith.mulf %46, %45 : vector<16x32xf32>
      %cst_28 = arith.constant 5.000000e-01 : f32
      %48 = vector.broadcast %cst_28 : f32 to vector<16x32xf32>
      %49 = arith.addf %47, %48 : vector<16x32xf32>
      %50 = vector.extract_strided_slice %27 {offsets = [0, 64], sizes = [16, 32], strides = [1, 1]} : vector<16x128xbf16> to vector<16x32xbf16>
      %51 = arith.extf %50 : vector<16x32xbf16> to vector<16x32xf32>
      %52 = vector.extract_strided_slice %23 {offsets = [0, 64], sizes = [16, 32], strides = [1, 1]} : vector<16x128xf32> to vector<16x32xf32>
      %53 = arith.addf %51, %52 : vector<16x32xf32>
      %54 = math.tanh %53 : vector<16x32xf32>
      %55 = vector.extract_strided_slice %27 {offsets = [0, 96], sizes = [16, 32], strides = [1, 1]} : vector<16x128xbf16> to vector<16x32xbf16>
      %56 = arith.extf %55 : vector<16x32xbf16> to vector<16x32xf32>
      %57 = vector.extract_strided_slice %23 {offsets = [0, 96], sizes = [16, 32], strides = [1, 1]} : vector<16x128xf32> to vector<16x32xf32>
      %58 = arith.addf %56, %57 : vector<16x32xf32>
      %cst_29 = arith.constant 5.000000e-01 : f32
      %59 = vector.broadcast %cst_29 : f32 to vector<16x32xf32>
      %60 = arith.mulf %59, %58 : vector<16x32xf32>
      %61 = math.tanh %60 : vector<16x32xf32>
      %cst_30 = arith.constant 5.000000e-01 : f32
      %62 = vector.broadcast %cst_30 : f32 to vector<16x32xf32>
      %63 = arith.mulf %62, %61 : vector<16x32xf32>
      %cst_31 = arith.constant 5.000000e-01 : f32
      %64 = vector.broadcast %cst_31 : f32 to vector<16x32xf32>
      %65 = arith.addf %63, %64 : vector<16x32xf32>
      %66 = arith.mulf %49, %22 : vector<16x32xf32>
      %67 = arith.mulf %38, %54 : vector<16x32xf32>
      %68 = arith.addf %66, %67 : vector<16x32xf32>
      %c0_32 = arith.constant 0 : index
      %c0_33 = arith.constant 0 : index
      %69 = vector.load %arg11[%c0_32, %c0_33] : memref<16x32xf32, #tpu.memory_space<vmem>>, vector<16x32xf32>
      tpu.vector_store %arg11[%c0_32, %c0_33], %68 {strides = array<i32>} : memref<16x32xf32, #tpu.memory_space<vmem>>, vector<16x32xf32>,
      %70 = math.tanh %68 : vector<16x32xf32>
      %71 = arith.mulf %65, %70 : vector<16x32xf32>
      %72 = arith.truncf %71 : vector<16x32xf32> to vector<16x32xbf16>
      %c0_34 = arith.constant 0 : index
      %c0_35 = arith.constant 0 : index
      %73 = vector.load %arg10[%c0_34, %c0_35] : memref<16x32xbf16, #tpu.memory_space<vmem>>, vector<16x32xbf16>
      tpu.vector_store %arg10[%c0_34, %c0_35], %72 {strides = array<i32>} : memref<16x32xbf16, #tpu.memory_space<vmem>>, vector<16x32xbf16>,
    }
    %c0_i32_15 = arith.constant 0 : i32
    %18 = arith.cmpi eq, %arg1, %c0_i32_15 : i32
    %19 = arith.extui %18 : i1 to i32
    %c0_i32_16 = arith.constant 0 : i32
    %20 = arith.cmpi ne, %19, %c0_i32_16 : i32
    scf.if %20 {
      %c0_17 = arith.constant 0 : index
      %c0_18 = arith.constant 0 : index
      %21 = vector.load %arg10[%c0_17, %c0_18] : memref<16x32xbf16, #tpu.memory_space<vmem>>, vector<16x32xbf16>
      %22 = arith.extf %21 : vector<16x32xbf16> to vector<16x32xf32>
      %c0_19 = arith.constant 0 : index
      %c0_20 = arith.constant 0 : index
      %23 = vector.load %arg8[%c0_19, %c0_20] : memref<16x32xf32, #tpu.memory_space<vmem>>, vector<16x32xf32>
      tpu.vector_store %arg8[%c0_19, %c0_20], %22 {strides = array<i32>} : memref<16x32xf32, #tpu.memory_space<vmem>>, vector<16x32xf32>,
      %c0_21 = arith.constant 0 : index
      %c0_22 = arith.constant 0 : index
      %24 = vector.load %arg6[%c0_21, %c0_22] : memref<32x128xbf16, #tpu.memory_space<vmem>>, vector<32x128xbf16>
      %cst_23 = arith.constant dense<0.000000e+00> : vector<16x128xf32>
      %25 = tpu.matmul %21, %24, %cst_23 {dimension_numbers = #tpu.dot_dimension_numbers<[1], [0], [0], [1], [0, 0, 1, 1], [], []>} : vector<16x32xbf16>, vector<32x128xbf16>, vector<16x128xf32> -> vector<16x128xf32>
      %c0_24 = arith.constant 0 : index
      %c0_25 = arith.constant 0 : index
      %26 = vector.load %arg7[%c0_24, %c0_25] : memref<1x128xf32, #tpu.memory_space<vmem>>, vector<1x128xf32>
      %27 = vector.broadcast %26 : vector<1x128xf32> to vector<16x128xf32>
      %28 = arith.addf %25, %27 : vector<16x128xf32>
      %c0_26 = arith.constant 0 : index
      %c0_27 = arith.constant 0 : index
      %29 = vector.load %arg9[%c0_26, %c0_27] : memref<16x128xf32, #tpu.memory_space<vmem>>, vector<16x128xf32>
      tpu.vector_store %arg9[%c0_26, %c0_27], %28 {strides = array<i32>} : memref<16x128xf32, #tpu.memory_space<vmem>>, vector<16x128xf32>,
    } else {
    }
    return
  }
  func.func @transform_0(%arg0: i32, %arg1: i32) -> (i32, i32, i32) {
    %c0_i32 = arith.constant 0 : i32
    %c0_i32_0 = arith.constant 0 : i32
    return %arg1, %arg0, %c0_i32 : i32, i32, i32
  }
  func.func @transform_1(%arg0: i32, %arg1: i32) -> (i32, i32) {
    %c0_i32 = arith.constant 0 : i32
    %c0_i32_0 = arith.constant 0 : i32
    %c0_i32_1 = arith.constant 0 : i32
    return %c0_i32, %c0_i32_0 : i32, i32
  }
  func.func @transform_2(%arg0: i32, %arg1: i32) -> (i32, i32) {
    %c0_i32 = arith.constant 0 : i32
    %c0_i32_0 = arith.constant 0 : i32
    %c0_i32_1 = arith.constant 0 : i32
    return %c0_i32, %c0_i32_0 : i32, i32
  }
  func.func @transform_3(%arg0: i32, %arg1: i32) -> (i32, i32) {
    %c0_i32 = arith.constant 0 : i32
    %c0_i32_0 = arith.constant 0 : i32
    %c0_i32_1 = arith.constant 0 : i32
    return %c0_i32, %c0_i32_0 : i32, i32
  }
  func.func @transform_4(%arg0: i32, %arg1: i32) -> (i32, i32) {
    %c0_i32 = arith.constant 0 : i32
    %c0_i32_0 = arith.constant 0 : i32
    %c0_i32_1 = arith.constant 0 : i32
    return %c0_i32, %c0_i32_0 : i32, i32
  }
  func.func @transform_5(%arg0: i32, %arg1: i32) -> (i32, i32) {
    %c0_i32 = arith.constant 0 : i32
    %c0_i32_0 = arith.constant 0 : i32
    %c0_i32_1 = arith.constant 0 : i32
    return %c0_i32, %c0_i32_0 : i32, i32
  }
  func.func @transform_6(%arg0: i32, %arg1: i32) -> (i32, i32) {
    %c0_i32 = arith.constant 0 : i32
    %c0_i32_0 = arith.constant 0 : i32
    return %arg0, %c0_i32 : i32, i32
  }
  func.func @transform_7(%arg0: i32, %arg1: i32) -> (i32, i32) {
    %c0_i32 = arith.constant 0 : i32
    %c0_i32_0 = arith.constant 0 : i32
    return %arg0, %c0_i32 : i32, i32
  }
}

</mosaic_0001>

<bundles_post_ra>
// kernel: run.1
= control target key start
LH: loop header
LB: loop body
LE: loop exit
PB: predicated region body
PF: predicated region fallthrough
CT: control target
= control target key end

     0   :  { %vm30_vm0 = vcmask 257024   ;;  %vm33_vm1 = vcmask 261120   ;;  %v805_v0 = vmov 0   ;;  %v806_v2 = vmov 0.0   ;;  %s975_s1 = inlined_call_operand.vmem [shape: bf16[32,128], index: 1, kind: input, shape index: {}]   ;;  %s976_s4 = inlined_call_operand.vmem [shape: bf16[32,128], index: 4, kind: input, shape index: {}]   ;;  %s977_s5 = inlined_call_operand.vmem [shape: f32[1,128], index: 5, kind: input, shape index: {}]   ;;  %s978_s6 = inlined_call_operand.vmem [shape: f32[16,32], index: 6, kind: output, shape index: {0}]   ;;  %s979_s7 = inlined_call_operand.vmem [shape: f32[16,128], index: 7, kind: output, shape index: {1}]   ;;  %s980_s0 = inlined_call_operand.vmem [shape: bf16[8,16,32], index: 0, kind: input, shape index: {}]   ;;  %s981_s2 = inlined_call_operand.vmem [shape: bf16[32,128], index: 2, kind: input, shape index: {}]   ;;  %s982_s3 = inlined_call_operand.vmem [shape: f32[1,128], index: 3, kind: input, shape index: {}]  }
   0x1   :  { %31 = vst.msk [vmem:[#allocation2] sm:$0xf] %vm30_vm0, %v805_v0  ;;  %32 = vst.msk [vmem:[#allocation2 + $0x4] sm:$0xf] %vm30_vm0, %v805_v0  ;;  %v771_v1 = vld [vmem:[%s975_s1 + $0x8] sm:$0xff]   ;;  %v772_v3 = vld [vmem:[%s975_s1] sm:$0xff]  }
   0x2   :  { %34 = vst.msk [vmem:[#allocation3] sm:$0xff] %vm33_vm1, %v806_v2  ;;  %35 = vst.msk [vmem:[#allocation3 + $0x8] sm:$0xff] %vm33_vm1, %v806_v2  ;;  %715 = vmatprep.subr.bf16.mxu0 %v771_v1  ;;  %751 = vmatprep.subr.bf16.mxu1 %v771_v1  ;;  %v773_v4 = vld [vmem:[%s980_s0] sm:$0xff]   ;;  %v775_v6 = vld [vmem:[%s980_s0 + $0x8] sm:$0xff]  }
   0x3   :  { %716 = vmatpush3.bf16.msra.mxu0 %v771_v1  ;;  %753 = vmatpush3.bf16.msra.mxu1 %v771_v1  ;;  %v774_v5 = vld [vmem:[%s980_s0 + $0x20] sm:$0xff]   ;;  %v776_v7 = vld [vmem:[%s980_s0 + $0x28] sm:$0xff]   ;;  %v777_v8 = vld [vmem:[%s980_s0 + $0x10] sm:$0xff]  }
   0x4   :  { %717 = vmatprep.subr.bf16.mxu0 %v772_v3  ;;  %752 = vmatprep.subr.bf16.mxu1 %v772_v3  ;;  %v778_v9 = vld [vmem:[%s980_s0 + $0x30] sm:$0xff]   ;;  %v779_v10 = vld [vmem:[%s980_s0 + $0x18] sm:$0xff]   ;;  %v900_v12 = vld [vmem:[%s981_s2] sm:$0xf] }
   0x5   :  { %719 = vmatprep.mubr.msk.bf16.mxu0 %vm33_vm1, %v773_v4  ;;  %727 = vmatprep.mubr.msk.bf16.mxu1 %vm33_vm1, %v774_v5  ;;  %v780_v11 = vld [vmem:[%s980_s0 + $0x38] sm:$0xff]   ;;  %v905_v13 = vld [vmem:[%s981_s2 + $0x4] sm:$0xf]  ;;  %v910_v14 = vld [vmem:[%s981_s2 + $0x8] sm:$0xf] }
   0x6   :  { %v915_v15 = vld [vmem:[%s981_s2 + $0xc] sm:$0xf]  ;;  %v582_v18 = vld [vmem:[%s982_s3] ss:$0 sm:$0xff]  ;;  %s920_s2 = smov 0  }
   0x7   :  { %718 = vmatpush3.bf16.msra.mxu0 %v772_v3  ;;  %754 = vmatpush3.bf16.msra.mxu1 %v772_v3 }
   0xa   :  { %720 = vmatmul.mubr.msk.bf16.vlgmr.msra.gmra.mxu0 %vm33_vm1, %v775_v6  ;;  %728 = vmatmul.mubr.msk.bf16.vlgmr.msra.gmra.mxu1 %vm33_vm1, %v776_v7 }
   0xb   :  { %723 = vmatprep.mubr.msk.bf16.mxu0 %vm33_vm1, %v777_v8  ;;  %731 = vmatprep.mubr.msk.bf16.mxu1 %vm33_vm1, %v778_v9 }
  0x12   :  { %724 = vmatmul.mubr.msk.bf16.gmra.mxu0 %vm33_vm1, %v779_v10  ;;  %732 = vmatmul.mubr.msk.bf16.gmra.mxu1 %vm33_vm1, %v780_v11 }
  0xca   :  { %v721_v16 = vpop.f32.mrf.mxu0  ;;  %v729_v17 = vpop.f32.mrf.mxu1 }
  0xcb   :  { %v183_v23 = vadd.f32 %v721_v16, %v582_v18  ;;  %v215_v24 = vadd.f32 %v729_v17, %v582_v18 }
  0xcc   :  { %v174_v19 = vpop.f32.mrf.mxu0  ;;  %v206_v20 = vpop.f32.mrf.mxu1 }
  0xcd   :  { %v175_v27 = vadd.f32 %v582_v18, %v174_v19  ;;  %v207_v28 = vadd.f32 %v582_v18, %v206_v20 }
  0xce   :  { %v722_v21 = vpop.f32.mrf.mxu0  ;;  %v730_v22 = vpop.f32.mrf.mxu1 }
  0xcf   :  { %v186_v25 = vadd.f32 %v722_v21, %v582_v18  ;;  %v218_v26 = vadd.f32 %v730_v22, %v582_v18 }
  0xd0   :  { %v177_v29 = vpop.f32.mrf.mxu0  ;;  %v209_v30 = vpop.f32.mrf.mxu1 }
  0xd1   :  { %v656_v31 = vpack.c.bf16 %v186_v25, %v183_v23  ;;  %v676_v32 = vpack.c.bf16 %v218_v26, %v215_v24  ;;  %v178_v33 = vadd.f32 %v582_v18, %v177_v29  ;;  %v210_v34 = vadd.f32 %v582_v18, %v209_v30 }
  0xd2   :  { %v725_v35 = vpop.f32.mrf.mxu0  ;;  %v733_v36 = vpop.f32.mrf.mxu1 }
  0xd3   :  { %692 = vst [vmem:[#allocation4 + $0x8] sm:$0xff] %v656_v31   ;;  %696 = vst [vmem:[#allocation4 + $0x28] sm:$0xff] %v676_v32   ;;  %v651_v37 = vpack.c.bf16 %v178_v33, %v175_v27  ;;  %v671_v38 = vpack.c.bf16 %v210_v34, %v207_v28  ;;  %v199_v43 = vadd.f32 %v725_v35, %v582_v18 }
  0xd4   :  { %v190_v39 = vpop.f32.mrf.mxu0  ;;  %v222_v40 = vpop.f32.mrf.mxu1  ;;  %v231_v44 = vadd.f32 %v733_v36, %v582_v18 }
  0xd5   :  { %652 = vst [vmem:[#allocation4] sm:$0xff] %v651_v37   ;;  %695 = vst [vmem:[#allocation4 + $0x20] sm:$0xff] %v671_v38   ;;  %v191_v47 = vadd.f32 %v582_v18, %v190_v39  ;;  %v223_v48 = vadd.f32 %v582_v18, %v222_v40 }
  0xd6   :  { %v726_v41 = vpop.f32.mrf.mxu0  ;;  %v734_v42 = vpop.f32.mrf.mxu1 }
  0xd7   :  { %v202_v45 = vadd.f32 %v726_v41, %v582_v18  ;;  %v234_v46 = vadd.f32 %v734_v42, %v582_v18 }
  0xd8   :  { %v193_v49 = vpop.f32.mrf.mxu0  ;;  %v225_v50 = vpop.f32.mrf.mxu1 }
  0xd9   :  { %v666_v51 = vpack.c.bf16 %v202_v45, %v199_v43  ;;  %v686_v52 = vpack.c.bf16 %v234_v46, %v231_v44  ;;  %v194_v53 = vadd.f32 %v582_v18, %v193_v49  ;;  %v226_v54 = vadd.f32 %v582_v18, %v225_v50 }
  0xdb   :  { %694 = vst [vmem:[#allocation4 + $0x18] sm:$0xff] %v666_v51   ;;  %698 = vst [vmem:[#allocation4 + $0x38] sm:$0xff] %v686_v52   ;;  %v661_v55 = vpack.c.bf16 %v194_v53, %v191_v47  ;;  %v681_v56 = vpack.c.bf16 %v226_v54, %v223_v48 }
  0xdd   :  { %693 = vst [vmem:[#allocation4 + $0x10] sm:$0xff] %v661_v55   ;;  %697 = vst [vmem:[#allocation4 + $0x30] sm:$0xff] %v681_v56  }
  0xde LB: > { %v619_v57 = vcombine.low %v910_v14, %v915_v15  ;;  %v807_v58 = vmov 0.0   ;;  %vm808_vm2 = vmmov 0   ;;  %v333_v59 = vld [vmem:[#allocation3] sm:$0xff]  ;;  %v618_v60 = vcombine.low %v900_v12, %v905_v13  ;;  %s809_s3 = smov 32   ;;  %v334_v61 = vld [vmem:[#allocation3 + $0x8] sm:$0xff]  ;;  %v781_v62 = vld [vmem:[#allocation2] sm:$0xff]   ;;  %s803_s2 = sphi %s920_s2, %s328_s2  }
  0xdf   : > { %735 = vmatprep.subr.bf16.mxu0 %v807_v58  ;;  %739 = vmatprep.mubr.msk.bf16.mxu0 %vm808_vm2, %v807_v58  ;;  %s621_s29 = sshll.u32 %s803_s2, 4  ;;  %s810_s10 = smov 64  }
  0xe0   : > { %736 = vmatpush3.bf16.msra.mxu0 %v619_v57  ;;  %419 = vrot.lane.b32.xlu1 %v333_v59, %s809_s3  ;;  %s397_s30 = sshra.s32 %s621_s29, 3  ;;  %s811_s1 = smov 96  }
  0xe1   : > { %737 = vmatprep.subr.bf16.mxu0 %v807_v58  ;;  %s622_s8 = sshll.u32 %s397_s30, 2  ;;  %s328_s2 = sadd.s32 1, %s803_s2  }
  0xe2   : > { %s400_s9 = scalar_lea.vmem [#allocation4], %s622_s8  ;;  %p327_p0 = scmp.ge.s32.totalorder %s328_s2, 8 }
  0xe3   :  { %v794_v47 = vld [vmem:[%s976_s4 + $0x8] sm:$0xff] (%p327_p0)   ;;  %vm812_vm3 = vmmov (%p327_p0), 0   ;;  %v795_v48 = vld [vmem:[%s976_s4] sm:$0xff] (%p327_p0)  }
  0xe4   : > { %738 = vmatpush3.bf16.msra.mxu0 %v618_v60  ;;  %421 = vrot.lane.b32.xlu1 %v334_v61, %s809_s3  ;;  %v689_v63 = vld [vmem:[%s400_s9] sm:$0xff]  }
  0xe5   : > { %v690_v0 = vunpack.c.l.bf16 %v689_v63  ;;  %v691_v4 = vunpack.c.h.bf16 %v689_v63  ;;  %743 = vmatprep.subr.bf16.mxu0 (%p327_p0), %v806_v2  ;;  %v625_v12 = vld [vmem:[%s977_s5] ss:$0 sm:$0xff] (%p327_p0) }
  0xe7   : > { %740 = vmatmul.mubr.msk.bf16.vlgmr.msra.gmra.mxu0 %vm33_vm1, %v781_v62 }
  0xe8   :  { %747 = vmatprep.mubr.msk.bf16.mxu0 (%p327_p0), %vm812_vm3, %v806_v2  ;;  %744 = vmatpush3.bf16.msra.mxu0 (%p327_p0), %v794_v47 }
  0xe9   :  { %745 = vmatprep.subr.bf16.mxu0 (%p327_p0), %v806_v2 }
  0xec   :  { %746 = vmatpush3.bf16.msra.mxu0 (%p327_p0), %v795_v48 }
 0x152   : > { %v420_v27 = vpop.permute.xlu1 %419 }
 0x156   : > { %v422_v29 = vpop.permute.xlu1 %421 }
 0x1a7   : > { %v389_v1 = vpop.f32.mrf.mxu0 }
 0x1a8   : > { %v405_v3 = vadd.f32 %v690_v0, %v389_v1 }
 0x1a9   : > { %v741_v5 = vpop.f32.mrf.mxu0 }
 0x1aa   : > { %782 = vtanh.f32 %v405_v3  ;;  %v407_v11 = vmul.f32 0.5, %v405_v3 }
 0x1ab   : > { %v392_v6 = vpop.f32.mrf.mxu0 }
 0x1ac   : > { %v406_v7 = vadd.f32 %v691_v4, %v392_v6 }
 0x1ad   : > { %v742_v8 = vpop.f32.mrf.mxu0 }
 0x1ae   : > { %784 = vtanh.f32 %v406_v7  ;;  %v408_v16 = vmul.f32 0.5, %v406_v7 }
 0x1af   : > { %786 = vtanh.f32 %v407_v11 }
 0x1b0   : > { %788 = vtanh.f32 %v408_v16 }
 0x1b7   : > { %v783_v9 = vpop.eup %782 }
 0x1b8   : > { %429 = vrot.lane.b32.xlu0 %v783_v9, %s810_s10 }
 0x1bb   : > { %v785_v10 = vpop.eup %784 }
 0x1bc   : > { %431 = vrot.lane.b32.xlu0 %v785_v10, %s810_s10  ;;  %v787_v17 = vpop.eup %786 }
 0x1bd   : > { %v411_v18 = vmul.f32 0.5, %v787_v17  ;;  %v789_v19 = vpop.eup %788 }
 0x1be   : > { %v412_v21 = vmul.f32 0.5, %v789_v19 }
 0x1bf   : > { %v413_v20 = vadd.f32 0.5, %v411_v18 }
 0x1c0   : > { %v414_v24 = vadd.f32 0.5, %v412_v21 }
 0x1c1   : > { %v425_v28 = vmul.f32 %v420_v27, %v413_v20 }
 0x1c2   : > { %v426_v32 = vmul.f32 %v422_v29, %v414_v24 }
 0x22a   : > { %v430_v22 = vpop.permute.xlu0 %429 }
 0x22b   : > { %v435_v23 = vmul.f32 %v430_v22, %v413_v20 }
 0x22d   : > { %439 = vrot.lane.b32.xlu0 %v435_v23, %s809_s3 }
 0x22e   : > { %v432_v25 = vpop.permute.xlu0 %431 }
 0x22f   : > { %v436_v26 = vmul.f32 %v432_v25, %v414_v24 }
 0x231   : > { %441 = vrot.lane.b32.xlu1 %v436_v26, %s809_s3 }
 0x29f   : > { %v440_v30 = vpop.permute.xlu0 %439 }
 0x2a0   : > { %v445_v31 = vadd.f32 %v440_v30, %v425_v28 }
 0x2a2   : > { %790 = vtanh.f32 %v445_v31 }
 0x2a3   : > { %v442_v33 = vpop.permute.xlu1 %441 }
 0x2a4   : > { %v446_v34 = vadd.f32 %v442_v33, %v426_v32 }
 0x2a6   : > { %792 = vtanh.f32 %v446_v34 }
 0x2af   : > { %v791_v35 = vpop.eup %790 }
 0x2b0   : > { %461 = vrot.lane.b32.xlu0 %v791_v35, %s810_s10 }
 0x2b3   : > { %v793_v36 = vpop.eup %792 }
 0x2b4   : > { %463 = vrot.lane.b32.xlu1 %v793_v36, %s810_s10  ;;  %449 = vrot.lane.b32.xlu0 %v445_v31, %s811_s1 }
 0x2b8   : > { %451 = vrot.lane.b32.xlu1 %v446_v34, %s811_s1 }
 0x322   : > { %v462_v37 = vpop.permute.xlu0 %461 }
 0x323   : > { %v467_v38 = vmul.f32 %v462_v37, %v413_v20 }
 0x325   : > { %v646_v39 = vpack.c.bf16 %v467_v38, %v467_v38 }
 0x326   : > { %v464_v40 = vpop.permute.xlu1 %463  ;;  %v450_v41 = vpop.permute.xlu0 %449 }
 0x327   : > { %v468_v42 = vmul.f32 %v464_v40, %v414_v24  ;;  %455 = vst.msk [vmem:[#allocation3] sm:$0xff] %vm33_vm1, %v450_v41  ;;  %475 = vrot.lane.b32.xlu0 %v646_v39, %s809_s3 }
 0x329   : > { %v647_v43 = vpack.c.bf16 %v468_v42, %v468_v42 }
 0x32a   : > { %v452_v44 = vpop.permute.xlu1 %451 }
 0x32b   : > { %456 = vst.msk [vmem:[#allocation3 + $0x8] sm:$0xff] %vm33_vm1, %v452_v44  ;;  %477 = vrot.lane.b32.xlu1 %v647_v43, %s809_s3 }
 0x399   : > { %v476_v45 = vpop.permute.xlu0 %475 }
 0x39a   : > { %482 = vst.msk [vmem:[#allocation2] sm:$0xf] %vm30_vm0, %v476_v45 }
 0x39d   : > { %v478_v46 = vpop.permute.xlu1 %477 }
 0x39e   : > { %483 = vst.msk [vmem:[#allocation2 + $0x4] sm:$0xf] %vm30_vm0, %v478_v46 }
 0x39f   :  { %330 = sbr.rel (!%p327_p0) target bundleno = 222 (0xde), region = 68 }
 0x3a5   :  { %v487_v49 = vld [vmem:[#allocation2] sm:$0xff]  }
 0x3a6   :  { %v489_v50 = vunpack.c.l.bf16 %v487_v49  ;;  %v490_v51 = vunpack.c.h.bf16 %v487_v49  ;;  %748 = vmatmul.mubr.msk.bf16.vlgmr.msra.gmra.mxu0 %vm33_vm1, %v487_v49 }
 0x3a8   :  { %491 = vst.msk [vmem:[%s978_s6] sm:$0xff] %vm33_vm1, %v489_v50  ;;  %492 = vst.msk [vmem:[%s978_s6 + $0x8] sm:$0xff] %vm33_vm1, %v490_v51 }
 0x466   :  { %v558_v2 = vpop.f32.mrf.mxu0 }
 0x467   :  { %v559_v13 = vadd.f32 %v625_v12, %v558_v2 }
 0x468   :  { %v749_v14 = vpop.f32.mrf.mxu0 }
 0x469   :  { %565 = vst [vmem:[%s979_s7] sm:$0xff] %v559_v13 }
 0x46a   :  { %v561_v15 = vpop.f32.mrf.mxu0 }
 0x46b   :  { %v562_v52 = vadd.f32 %v625_v12, %v561_v15 }
 0x46c   :  { %v750_v53 = vpop.f32.mrf.mxu0 }
 0x46d   :  { %566 = vst [vmem:[%s979_s7 + $0x8] sm:$0xff] %v562_v52 }

// kernel: run.1
= control target key start
LH: loop header
LB: loop body
LE: loop exit
PB: predicated region body
PF: predicated region fallthrough
CT: control target
= control target key end

     0   :  { %vm30_vm0 = vcmask 257024   ;;  %vm33_vm1 = vcmask 261120   ;;  %v805_v0 = vmov 0   ;;  %v806_v2 = vmov 0.0   ;;  %s975_s1 = inlined_call_operand.vmem [shape: bf16[32,128], index: 1, kind: input, shape index: {}]   ;;  %s976_s4 = inlined_call_operand.vmem [shape: bf16[32,128], index: 4, kind: input, shape index: {}]   ;;  %s977_s5 = inlined_call_operand.vmem [shape: f32[1,128], index: 5, kind: input, shape index: {}]   ;;  %s978_s6 = inlined_call_operand.vmem [shape: f32[16,32], index: 6, kind: output, shape index: {0}]   ;;  %s979_s7 = inlined_call_operand.vmem [shape: f32[16,128], index: 7, kind: output, shape index: {1}]   ;;  %s980_s0 = inlined_call_operand.vmem [shape: bf16[8,16,32], index: 0, kind: input, shape index: {}]   ;;  %s981_s2 = inlined_call_operand.vmem [shape: bf16[32,128], index: 2, kind: input, shape index: {}]   ;;  %s982_s3 = inlined_call_operand.vmem [shape: f32[1,128], index: 3, kind: input, shape index: {}]  }
   0x1   :  { %31 = vst.msk [vmem:[#allocation2] sm:$0xf] %vm30_vm0, %v805_v0  ;;  %32 = vst.msk [vmem:[#allocation2 + $0x4] sm:$0xf] %vm30_vm0, %v805_v0  ;;  %v771_v1 = vld [vmem:[%s975_s1 + $0x8] sm:$0xff]   ;;  %v772_v3 = vld [vmem:[%s975_s1] sm:$0xff]  }
   0x2   :  { %34 = vst.msk [vmem:[#allocation3] sm:$0xff] %vm33_vm1, %v806_v2  ;;  %35 = vst.msk [vmem:[#allocation3 + $0x8] sm:$0xff] %vm33_vm1, %v806_v2  ;;  %715 = vmatprep.subr.bf16.mxu0 %v771_v1  ;;  %751 = vmatprep.subr.bf16.mxu1 %v771_v1  ;;  %v773_v4 = vld [vmem:[%s980_s0] sm:$0xff]   ;;  %v775_v6 = vld [vmem:[%s980_s0 + $0x8] sm:$0xff]  }
   0x3   :  { %716 = vmatpush3.bf16.msra.mxu0 %v771_v1  ;;  %753 = vmatpush3.bf16.msra.mxu1 %v771_v1  ;;  %v774_v5 = vld [vmem:[%s980_s0 + $0x20] sm:$0xff]   ;;  %v776_v7 = vld [vmem:[%s980_s0 + $0x28] sm:$0xff]   ;;  %v777_v8 = vld [vmem:[%s980_s0 + $0x10] sm:$0xff]  }
   0x4   :  { %717 = vmatprep.subr.bf16.mxu0 %v772_v3  ;;  %752 = vmatprep.subr.bf16.mxu1 %v772_v3  ;;  %v778_v9 = vld [vmem:[%s980_s0 + $0x30] sm:$0xff]   ;;  %v779_v10 = vld [vmem:[%s980_s0 + $0x18] sm:$0xff]   ;;  %v900_v12 = vld [vmem:[%s981_s2] sm:$0xf] }
   0x5   :  { %719 = vmatprep.mubr.msk.bf16.mxu0 %vm33_vm1, %v773_v4  ;;  %727 = vmatprep.mubr.msk.bf16.mxu1 %vm33_vm1, %v774_v5  ;;  %v780_v11 = vld [vmem:[%s980_s0 + $0x38] sm:$0xff]   ;;  %v905_v13 = vld [vmem:[%s981_s2 + $0x4] sm:$0xf]  ;;  %v910_v14 = vld [vmem:[%s981_s2 + $0x8] sm:$0xf] }
   0x6   :  { %v915_v15 = vld [vmem:[%s981_s2 + $0xc] sm:$0xf]  ;;  %v582_v18 = vld [vmem:[%s982_s3] ss:$0 sm:$0xff]  ;;  %s920_s2 = smov 0  }
   0x7   :  { %718 = vmatpush3.bf16.msra.mxu0 %v772_v3  ;;  %754 = vmatpush3.bf16.msra.mxu1 %v772_v3 }
   0xa   :  { %720 = vmatmul.mubr.msk.bf16.vlgmr.msra.gmra.mxu0 %vm33_vm1, %v775_v6  ;;  %728 = vmatmul.mubr.msk.bf16.vlgmr.msra.gmra.mxu1 %vm33_vm1, %v776_v7 }
   0xb   :  { %723 = vmatprep.mubr.msk.bf16.mxu0 %vm33_vm1, %v777_v8  ;;  %731 = vmatprep.mubr.msk.bf16.mxu1 %vm33_vm1, %v778_v9 }
  0x12   :  { %724 = vmatmul.mubr.msk.bf16.gmra.mxu0 %vm33_vm1, %v779_v10  ;;  %732 = vmatmul.mubr.msk.bf16.gmra.mxu1 %vm33_vm1, %v780_v11 }
  0xca   :  { %v721_v16 = vpop.f32.mrf.mxu0  ;;  %v729_v17 = vpop.f32.mrf.mxu1 }
  0xcb   :  { %v183_v23 = vadd.f32 %v721_v16, %v582_v18  ;;  %v215_v24 = vadd.f32 %v729_v17, %v582_v18 }
  0xcc   :  { %v174_v19 = vpop.f32.mrf.mxu0  ;;  %v206_v20 = vpop.f32.mrf.mxu1 }
  0xcd   :  { %v175_v27 = vadd.f32 %v582_v18, %v174_v19  ;;  %v207_v28 = vadd.f32 %v582_v18, %v206_v20 }
  0xce   :  { %v722_v21 = vpop.f32.mrf.mxu0  ;;  %v730_v22 = vpop.f32.mrf.mxu1 }
  0xcf   :  { %v186_v25 = vadd.f32 %v722_v21, %v582_v18  ;;  %v218_v26 = vadd.f32 %v730_v22, %v582_v18 }
  0xd0   :  { %v177_v29 = vpop.f32.mrf.mxu0  ;;  %v209_v30 = vpop.f32.mrf.mxu1 }
  0xd1   :  { %v656_v31 = vpack.c.bf16 %v186_v25, %v183_v23  ;;  %v676_v32 = vpack.c.bf16 %v218_v26, %v215_v24  ;;  %v178_v33 = vadd.f32 %v582_v18, %v177_v29  ;;  %v210_v34 = vadd.f32 %v582_v18, %v209_v30 }
  0xd2   :  { %v725_v35 = vpop.f32.mrf.mxu0  ;;  %v733_v36 = vpop.f32.mrf.mxu1 }
  0xd3   :  { %692 = vst [vmem:[#allocation4 + $0x8] sm:$0xff] %v656_v31   ;;  %696 = vst [vmem:[#allocation4 + $0x28] sm:$0xff] %v676_v32   ;;  %v651_v37 = vpack.c.bf16 %v178_v33, %v175_v27  ;;  %v671_v38 = vpack.c.bf16 %v210_v34, %v207_v28  ;;  %v199_v43 = vadd.f32 %v725_v35, %v582_v18 }
  0xd4   :  { %v190_v39 = vpop.f32.mrf.mxu0  ;;  %v222_v40 = vpop.f32.mrf.mxu1  ;;  %v231_v44 = vadd.f32 %v733_v36, %v582_v18 }
  0xd5   :  { %652 = vst [vmem:[#allocation4] sm:$0xff] %v651_v37   ;;  %695 = vst [vmem:[#allocation4 + $0x20] sm:$0xff] %v671_v38   ;;  %v191_v47 = vadd.f32 %v582_v18, %v190_v39  ;;  %v223_v48 = vadd.f32 %v582_v18, %v222_v40 }
  0xd6   :  { %v726_v41 = vpop.f32.mrf.mxu0  ;;  %v734_v42 = vpop.f32.mrf.mxu1 }
  0xd7   :  { %v202_v45 = vadd.f32 %v726_v41, %v582_v18  ;;  %v234_v46 = vadd.f32 %v734_v42, %v582_v18 }
  0xd8   :  { %v193_v49 = vpop.f32.mrf.mxu0  ;;  %v225_v50 = vpop.f32.mrf.mxu1 }
  0xd9   :  { %v666_v51 = vpack.c.bf16 %v202_v45, %v199_v43  ;;  %v686_v52 = vpack.c.bf16 %v234_v46, %v231_v44  ;;  %v194_v53 = vadd.f32 %v582_v18, %v193_v49  ;;  %v226_v54 = vadd.f32 %v582_v18, %v225_v50 }
  0xdb   :  { %694 = vst [vmem:[#allocation4 + $0x18] sm:$0xff] %v666_v51   ;;  %698 = vst [vmem:[#allocation4 + $0x38] sm:$0xff] %v686_v52   ;;  %v661_v55 = vpack.c.bf16 %v194_v53, %v191_v47  ;;  %v681_v56 = vpack.c.bf16 %v226_v54, %v223_v48 }
  0xdd   :  { %693 = vst [vmem:[#allocation4 + $0x10] sm:$0xff] %v661_v55   ;;  %697 = vst [vmem:[#allocation4 + $0x30] sm:$0xff] %v681_v56  }
  0xde LB: > { %v619_v57 = vcombine.low %v910_v14, %v915_v15  ;;  %v807_v58 = vmov 0.0   ;;  %vm808_vm2 = vmmov 0   ;;  %v333_v59 = vld [vmem:[#allocation3] sm:$0xff]  ;;  %v618_v60 = vcombine.low %v900_v12, %v905_v13  ;;  %s809_s3 = smov 32   ;;  %v334_v61 = vld [vmem:[#allocation3 + $0x8] sm:$0xff]  ;;  %v781_v62 = vld [vmem:[#allocation2] sm:$0xff]   ;;  %s803_s2 = sphi %s920_s2, %s328_s2  }
  0xdf   : > { %735 = vmatprep.subr.bf16.mxu0 %v807_v58  ;;  %739 = vmatprep.mubr.msk.bf16.mxu0 %vm808_vm2, %v807_v58  ;;  %s621_s29 = sshll.u32 %s803_s2, 4  ;;  %s810_s10 = smov 64  }
  0xe0   : > { %736 = vmatpush3.bf16.msra.mxu0 %v619_v57  ;;  %419 = vrot.lane.b32.xlu1 %v333_v59, %s809_s3  ;;  %s397_s30 = sshra.s32 %s621_s29, 3  ;;  %s811_s1 = smov 96  }
  0xe1   : > { %737 = vmatprep.subr.bf16.mxu0 %v807_v58  ;;  %s622_s8 = sshll.u32 %s397_s30, 2  ;;  %s328_s2 = sadd.s32 1, %s803_s2  }
  0xe2   : > { %s400_s9 = scalar_lea.vmem [#allocation4], %s622_s8  ;;  %p327_p0 = scmp.ge.s32.totalorder %s328_s2, 8 }
  0xe3   :  { %v794_v47 = vld [vmem:[%s976_s4 + $0x8] sm:$0xff] (%p327_p0)   ;;  %vm812_vm3 = vmmov (%p327_p0), 0   ;;  %v795_v48 = vld [vmem:[%s976_s4] sm:$0xff] (%p327_p0)  }
  0xe4   : > { %738 = vmatpush3.bf16.msra.mxu0 %v618_v60  ;;  %421 = vrot.lane.b32.xlu1 %v334_v61, %s809_s3  ;;  %v689_v63 = vld [vmem:[%s400_s9] sm:$0xff]  }
  0xe5   : > { %v690_v0 = vunpack.c.l.bf16 %v689_v63  ;;  %v691_v4 = vunpack.c.h.bf16 %v689_v63  ;;  %743 = vmatprep.subr.bf16.mxu0 (%p327_p0), %v806_v2  ;;  %v625_v12 = vld [vmem:[%s977_s5] ss:$0 sm:$0xff] (%p327_p0) }
  0xe7   : > { %740 = vmatmul.mubr.msk.bf16.vlgmr.msra.gmra.mxu0 %vm33_vm1, %v781_v62 }
  0xe8   :  { %747 = vmatprep.mubr.msk.bf16.mxu0 (%p327_p0), %vm812_vm3, %v806_v2  ;;  %744 = vmatpush3.bf16.msra.mxu0 (%p327_p0), %v794_v47 }
  0xe9   :  { %745 = vmatprep.subr.bf16.mxu0 (%p327_p0), %v806_v2 }
  0xec   :  { %746 = vmatpush3.bf16.msra.mxu0 (%p327_p0), %v795_v48 }
 0x152   : > { %v420_v27 = vpop.permute.xlu1 %419 }
 0x156   : > { %v422_v29 = vpop.permute.xlu1 %421 }
 0x1a7   : > { %v389_v1 = vpop.f32.mrf.mxu0 }
 0x1a8   : > { %v405_v3 = vadd.f32 %v690_v0, %v389_v1 }
 0x1a9   : > { %v741_v5 = vpop.f32.mrf.mxu0 }
 0x1aa   : > { %782 = vtanh.f32 %v405_v3  ;;  %v407_v11 = vmul.f32 0.5, %v405_v3 }
 0x1ab   : > { %v392_v6 = vpop.f32.mrf.mxu0 }
 0x1ac   : > { %v406_v7 = vadd.f32 %v691_v4, %v392_v6 }
 0x1ad   : > { %v742_v8 = vpop.f32.mrf.mxu0 }
 0x1ae   : > { %784 = vtanh.f32 %v406_v7  ;;  %v408_v16 = vmul.f32 0.5, %v406_v7 }
 0x1af   : > { %786 = vtanh.f32 %v407_v11 }
 0x1b0   : > { %788 = vtanh.f32 %v408_v16 }
 0x1b7   : > { %v783_v9 = vpop.eup %782 }
 0x1b8   : > { %429 = vrot.lane.b32.xlu0 %v783_v9, %s810_s10 }
 0x1bb   : > { %v785_v10 = vpop.eup %784 }
 0x1bc   : > { %431 = vrot.lane.b32.xlu0 %v785_v10, %s810_s10  ;;  %v787_v17 = vpop.eup %786 }
 0x1bd   : > { %v411_v18 = vmul.f32 0.5, %v787_v17  ;;  %v789_v19 = vpop.eup %788 }
 0x1be   : > { %v412_v21 = vmul.f32 0.5, %v789_v19 }
 0x1bf   : > { %v413_v20 = vadd.f32 0.5, %v411_v18 }
 0x1c0   : > { %v414_v24 = vadd.f32 0.5, %v412_v21 }
 0x1c1   : > { %v425_v28 = vmul.f32 %v420_v27, %v413_v20 }
 0x1c2   : > { %v426_v32 = vmul.f32 %v422_v29, %v414_v24 }
 0x22a   : > { %v430_v22 = vpop.permute.xlu0 %429 }
 0x22b   : > { %v435_v23 = vmul.f32 %v430_v22, %v413_v20 }
 0x22d   : > { %439 = vrot.lane.b32.xlu0 %v435_v23, %s809_s3 }
 0x22e   : > { %v432_v25 = vpop.permute.xlu0 %431 }
 0x22f   : > { %v436_v26 = vmul.f32 %v432_v25, %v414_v24 }
 0x231   : > { %441 = vrot.lane.b32.xlu1 %v436_v26, %s809_s3 }
 0x29f   : > { %v440_v30 = vpop.permute.xlu0 %439 }
 0x2a0   : > { %v445_v31 = vadd.f32 %v440_v30, %v425_v28 }
 0x2a2   : > { %790 = vtanh.f32 %v445_v31 }
 0x2a3   : > { %v442_v33 = vpop.permute.xlu1 %441 }
 0x2a4   : > { %v446_v34 = vadd.f32 %v442_v33, %v426_v32 }
 0x2a6   : > { %792 = vtanh.f32 %v446_v34 }
 0x2af   : > { %v791_v35 = vpop.eup %790 }
 0x2b0   : > { %461 = vrot.lane.b32.xlu0 %v791_v35, %s810_s10 }
 0x2b3   : > { %v793_v36 = vpop.eup %792 }
 0x2b4   : > { %463 = vrot.lane.b32.xlu1 %v793_v36, %s810_s10  ;;  %449 = vrot.lane.b32.xlu0 %v445_v31, %s811_s1 }
 0x2b8   : > { %451 = vrot.lane.b32.xlu1 %v446_v34, %s811_s1 }
 0x322   : > { %v462_v37 = vpop.permute.xlu0 %461 }
 0x323   : > { %v467_v38 = vmul.f32 %v462_v37, %v413_v20 }
 0x325   : > { %v646_v39 = vpack.c.bf16 %v467_v38, %v467_v38 }
 0x326   : > { %v464_v40 = vpop.permute.xlu1 %463  ;;  %v450_v41 = vpop.permute.xlu0 %449 }
 0x327   : > { %v468_v42 = vmul.f32 %v464_v40, %v414_v24  ;;  %455 = vst.msk [vmem:[#allocation3] sm:$0xff] %vm33_vm1, %v450_v41  ;;  %475 = vrot.lane.b32.xlu0 %v646_v39, %s809_s3 }
 0x329   : > { %v647_v43 = vpack.c.bf16 %v468_v42, %v468_v42 }
 0x32a   : > { %v452_v44 = vpop.permute.xlu1 %451 }
 0x32b   : > { %456 = vst.msk [vmem:[#allocation3 + $0x8] sm:$0xff] %vm33_vm1, %v452_v44  ;;  %477 = vrot.lane.b32.xlu1 %v647_v43, %s809_s3 }
 0x399   : > { %v476_v45 = vpop.permute.xlu0 %475 }
 0x39a   : > { %482 = vst.msk [vmem:[#allocation2] sm:$0xf] %vm30_vm0, %v476_v45 }
 0x39d   : > { %v478_v46 = vpop.permute.xlu1 %477 }
 0x39e   : > { %483 = vst.msk [vmem:[#allocation2 + $0x4] sm:$0xf] %vm30_vm0, %v478_v46 }
 0x39f   :  { %330 = sbr.rel (!%p327_p0) target bundleno = 222 (0xde), region = 68 }
 0x3a5   :  { %v487_v49 = vld [vmem:[#allocation2] sm:$0xff]  }
 0x3a6   :  { %v489_v50 = vunpack.c.l.bf16 %v487_v49  ;;  %v490_v51 = vunpack.c.h.bf16 %v487_v49  ;;  %748 = vmatmul.mubr.msk.bf16.vlgmr.msra.gmra.mxu0 %vm33_vm1, %v487_v49 }
 0x3a8   :  { %491 = vst.msk [vmem:[%s978_s6] sm:$0xff] %vm33_vm1, %v489_v50  ;;  %492 = vst.msk [vmem:[%s978_s6 + $0x8] sm:$0xff] %vm33_vm1, %v490_v51 }
 0x466   :  { %v558_v2 = vpop.f32.mrf.mxu0 }
 0x467   :  { %v559_v13 = vadd.f32 %v625_v12, %v558_v2 }
 0x468   :  { %v749_v14 = vpop.f32.mrf.mxu0 }
 0x469   :  { %565 = vst [vmem:[%s979_s7] sm:$0xff] %v559_v13 }
 0x46a   :  { %v561_v15 = vpop.f32.mrf.mxu0 }
 0x46b   :  { %v562_v52 = vadd.f32 %v625_v12, %v561_v15 }
 0x46c   :  { %v750_v53 = vpop.f32.mrf.mxu0 }
 0x46d   :  { %566 = vst [vmem:[%s979_s7 + $0x8] sm:$0xff] %v562_v52 }

</bundles_post_ra>
